<compile_context>
chip_gen: v6e
topology: v6e:2x2x1
jax: 0.10.0
libtpu: 0.0.40
codegen_flags: <defaults>
</compile_context>

<pallas_src>
import jax
import jax.numpy as jnp
from jax.experimental import pallas as pl
from jax.experimental.pallas import tpu as pltpu


_VMEM_BUDGET = 40 * 2**20      # conservative per-step budget, safe on v7x (64 MiB phys)
_VMEM_LIMIT_CAP = 48 * 2**20


def _round_up(a, b):
    return (a + b - 1) // b * b


def _pick_tile_and_vmem(tm, M, K, Ep, in_bytes, out_bytes):
    """Pick the row tile: >=2 grid steps when possible (v7x megacore), within VMEM budget."""
    tm = max(8, min(tm, _round_up(pl.cdiv(M, 2), 8)))

    def need(t):
        # 2x double-buffered x tile + 2x out tile + 2x resident weight + bias
        return (2 * t * K * in_bytes + 2 * t * Ep * out_bytes
                + 2 * K * Ep * in_bytes + 2 * Ep * 4)

    while tm > 8 and need(tm) > _VMEM_BUDGET:
        tm = max(8, _round_up(tm // 2, 8))
    vmem_limit = int(min(_VMEM_LIMIT_CAP, max(32 * 2**20, 1.25 * need(tm))))
    return tm, vmem_limit


def _patch_embed_kernel(x_ref, w_ref, b_ref, o_ref):
    # One tile of patch rows: (tm, K)[bf16] @ (K, Ep)[bf16] -> f32 acc, + bias(f32)
    acc = jnp.dot(x_ref[...], w_ref[...], preferred_element_type=jnp.float32)
    o_ref[...] = (acc + b_ref[...]).astype(o_ref.dtype)


def video_patch_embed(x, weight, bias, patch_size, *, tm=512,
                      nchw_output=True, out_dtype=None):
    """x: (B, F, C, H, W); weight: (E, C, P, P); bias: (E,).

    Returns (B*F, E, H//P, W//P) (NCHW, matching nn.Conv2d) when nchw_output=True,
    else (B*F, Hp*Wp, E) (the layout X-CLIP's consumer wants anyway)."""
    B, F, C, H, W = x.shape
    P = patch_size
    E = weight.shape[0]
    Hp, Wp = H // P, W // P
    N = B * F
    M = N * Hp * Wp
    K = C * P * P
    out_dtype = x.dtype if out_dtype is None else jnp.dtype(out_dtype)
    out_bytes = jnp.dtype(out_dtype).itemsize

    # ---- glue: patchify to GEMM layout. Cast to bf16 FIRST so the single
    # materialized transpose (fused with the convert) moves half the bytes. ----
    xb = x.astype(jnp.bfloat16)
    xp = xb.reshape(N, C, Hp, P, Wp, P)          # free (split-only reshape)
    xp = xp.transpose(0, 2, 4, 1, 3, 5)          # (N, Hp, Wp, C, P, P)  <- one HBM pass
    xp = xp.reshape(M, K)                        # (M, K) patch rows, (c, kh, kw) order
    wk = weight.reshape(E, K).T.astype(jnp.bfloat16)   # (K, E), same flatten order
    bk = bias.reshape(1, E).astype(jnp.float32)        # (1, E), f32 bias add

    # Lane-dense output: pad E on the (tiny) weight side only. No M or K padding.
    Ep = _round_up(E, 128)
    if Ep != E:
        wk = jnp.pad(wk, ((0, 0), (0, Ep - E)))
        bk = jnp.pad(bk, ((0, 0), (0, Ep - E)))

    tm_eff, vmem_limit = _pick_tile_and_vmem(tm, M, K, Ep, 2, out_bytes)
    grid = (pl.cdiv(M, tm_eff),)                 # partial last tile is masked by Pallas

    cost = pl.CostEstimate(
        flops=2 * M * K * Ep,
        transcendentals=0,
        bytes_accessed=M * K * 2 + K * Ep * 2 + Ep * 4 + M * Ep * out_bytes)

    # ---- hot path: tiled GEMM + bias in Pallas (weight & bias stay resident) ----
    out = pl.pallas_call(
        _patch_embed_kernel,
        out_shape=jax.ShapeDtypeStruct((M, Ep), out_dtype),
        grid=grid,
        in_specs=[
            pl.BlockSpec((tm_eff, K), lambda i: (i, 0)),   # K = full dim (no K pad)
            pl.BlockSpec((K, Ep), lambda i: (0, 0)),       # constant -> fetched once
            pl.BlockSpec((1, Ep), lambda i: (0, 0)),       # constant -> fetched once
        ],
        out_specs=pl.BlockSpec((tm_eff, Ep), lambda i: (i, 0)),
        compiler_params=pltpu.CompilerParams(
            dimension_semantics=("parallel",),
            vmem_limit_bytes=vmem_limit),
        cost_estimate=cost,
    )(xp, wk, bk)

    # ---- glue: strip the (weight-side) E pad, fold back to the requested layout ----
    if Ep != E:
        out = out[:, :E]
    out = out.reshape(N, Hp, Wp, E)
    if nchw_output:
        return out.transpose(0, 3, 1, 2)          # (N, E, Hp, Wp), like nn.Conv2d
    return out.reshape(N, Hp * Wp, E)             # (N, L, E), skips NCHW round trip


# ----------------------------- references / tests -----------------------------

def _reference_conv_f32(x, weight, bias, P):
    """True f32 conv (NCHW, stride=kernel=P), mirroring nn.Conv2d."""
    B, F, C, H, W = x.shape
    xr = x.reshape(B * F, C, H, W)
    y = jax.lax.conv_general_dilated(
        xr, weight, window_strides=(P, P), padding="VALID",
        dimension_numbers=("NCHW", "OIHW", "NCHW"),
        precision=jax.lax.Precision.HIGHEST)
    return y + bias.reshape(1, -1, 1, 1)


def _reference_bf16_gemm(x, weight, bias, P):
    """Rounding-matched reference: bf16 operands, f32 accumulation, f32 bias."""
    B, F, C, H, W = x.shape
    E = weight.shape[0]
    Hp, Wp = H // P, W // P
    N, M, K = B * F, B * F * (H // P) * (W // P), C * P * P
    xp = (x.astype(jnp.bfloat16).reshape(N, C, Hp, P, Wp, P)
          .transpose(0, 2, 4, 1, 3, 5).reshape(M, K))
    wk = weight.reshape(E, K).T.astype(jnp.bfloat16)
    out = jnp.dot(xp, wk, preferred_element_type=jnp.float32) + bias.astype(jnp.float32)
    return out.reshape(N, Hp, Wp, E).transpose(0, 3, 1, 2)


def _check_one(key, B, F, C, H, W, P, E):
    kx, kw, kb = jax.random.split(key, 3)
    x = jax.random.normal(kx, (B, F, C, H, W), dtype=jnp.float32)
    weight = jax.random.normal(kw, (E, C, P, P), dtype=jnp.float32) * 0.02
    bias = jax.random.normal(kb, (E,), dtype=jnp.float32) * 0.02
    Hp, Wp = H // P, W // P

    out = jax.block_until_ready(video_patch_embed(x, weight, bias, P))
    assert out.shape == (B * F, E, Hp, Wp), out.shape

    # Tight gate vs a rounding-matched pure-JAX GEMM.
    ref_bf16 = _reference_bf16_gemm(x, weight, bias, P)
    err = float(jnp.max(jnp.abs(out - ref_bf16)))
    assert err < 1e-4, f"mismatch vs bf16-matched reference, max abs err = {err}"

    # Loose gate vs the true f32 conv (bf16 operand rounding only).
    ref_f32 = _reference_conv_f32(x, weight, bias, P)
    err32 = float(jnp.max(jnp.abs(out - ref_f32)))
    assert err32 < 2e-2, f"mismatch vs f32 conv reference, max abs err = {err32}"

    # NLC fast path (skips the NCHW round trip) must agree with the NCHW result.
    out_nlc = jax.block_until_ready(
        video_patch_embed(x, weight, bias, P, nchw_output=False))
    assert out_nlc.shape == (B * F, Hp * Wp, E), out_nlc.shape
    assert jnp.allclose(
        out_nlc, out.transpose(0, 2, 3, 1).reshape(B * F, Hp * Wp, E),
        atol=1e-6, rtol=1e-6)

    # bf16 output-stream option.
    out_bf16 = jax.block_until_ready(
        video_patch_embed(x, weight, bias, P, out_dtype=jnp.bfloat16))
    assert out_bf16.dtype == jnp.bfloat16
    err_bf16 = float(jnp.max(jnp.abs(out_bf16.astype(jnp.float32) - ref_f32)))
    assert err_bf16 < 3e-2, f"bf16-out mismatch, max abs err = {err_bf16}"


if __name__ == "__main__":
    key = jax.random.PRNGKey(0)
    k1, k2 = jax.random.split(key)

    # Primary small config (img_size=32, patch=8, in_chans=3, embed_dim=32,
    # num_frames=2, batch=2): M=64 -> two full tiles (exercises the parallel grid).
    _check_one(k1, B=2, F=2, C=3, H=32, W=32, P=8, E=32)

    # Non-divisible M config (H=W=24 -> M=18, tm=16): exercises the cdiv grid with
    # a masked partial last tile (the behavior that replaced the jnp.pad of M).
    _check_one(k2, B=1, F=2, C=3, H=24, W=24, P=8, E=32)

    print("KERNEL_OK")
</pallas_src>

<mosaic_0001>
module attributes {stable_mosaic.version = 11 : i64} {
  func.func @_patch_embed_kernel(%arg0: i32, %arg1: memref<32x192xbf16, #tpu.memory_space<vmem>>, %arg2: memref<192x128xbf16, #tpu.memory_space<vmem>>, %arg3: memref<1x128xf32, #tpu.memory_space<vmem>>, %arg4: memref<32x128xf32, #tpu.memory_space<vmem>>) attributes {dimension_semantics = [#tpu.dimension_semantics<parallel>], iteration_bounds = array<i64: 2>, scalar_prefetch = 0 : i64, scratch_operands = 0 : i64, tpu.core_type = #tpu.core_type<tc>, window_params = [{transform_indices = @transform_0, window_bounds = array<i64: 32, 192>}, {pipeline_mode = #tpu.pipeline_mode<synchronous>, transform_indices = @transform_1, window_bounds = array<i64: 192, 128>}, {pipeline_mode = #tpu.pipeline_mode<synchronous>, transform_indices = @transform_2, window_bounds = array<i64: 1, 128>}, {transform_indices = @transform_3, window_bounds = array<i64: 32, 128>}]} {
    %c0 = arith.constant 0 : index
    %c0_0 = arith.constant 0 : index
    %0 = vector.load %arg1[%c0, %c0_0] : memref<32x192xbf16, #tpu.memory_space<vmem>>, vector<32x192xbf16>
    %c0_1 = arith.constant 0 : index
    %c0_2 = arith.constant 0 : index
    %1 = vector.load %arg2[%c0_1, %c0_2] : memref<192x128xbf16, #tpu.memory_space<vmem>>, vector<192x128xbf16>
    %cst = arith.constant dense<0.000000e+00> : vector<32x128xf32>
    %2 = tpu.matmul %0, %1, %cst {dimension_numbers = #tpu.dot_dimension_numbers<[1], [0], [0], [1], [0, 0, 1, 1], [], []>} : vector<32x192xbf16>, vector<192x128xbf16>, vector<32x128xf32> -> vector<32x128xf32>
    %c0_3 = arith.constant 0 : index
    %c0_4 = arith.constant 0 : index
    %3 = vector.load %arg3[%c0_3, %c0_4] : memref<1x128xf32, #tpu.memory_space<vmem>>, vector<1x128xf32>
    %4 = vector.broadcast %3 : vector<1x128xf32> to vector<32x128xf32>
    %5 = arith.addf %2, %4 : vector<32x128xf32>
    %c0_5 = arith.constant 0 : index
    %c0_6 = arith.constant 0 : index
    %6 = vector.load %arg4[%c0_5, %c0_6] : memref<32x128xf32, #tpu.memory_space<vmem>>, vector<32x128xf32>
    tpu.vector_store %arg4[%c0_5, %c0_6], %5 {strides = array<i32>} : memref<32x128xf32, #tpu.memory_space<vmem>>, vector<32x128xf32>,
    return
  }
  func.func @transform_0(%arg0: i32) -> (i32, i32) {
    %c0_i32 = arith.constant 0 : i32
    %c0_i32_0 = arith.constant 0 : i32
    return %arg0, %c0_i32 : i32, i32
  }
  func.func @transform_1(%arg0: i32) -> (i32, i32) {
    %c0_i32 = arith.constant 0 : i32
    %c0_i32_0 = arith.constant 0 : i32
    %c0_i32_1 = arith.constant 0 : i32
    return %c0_i32, %c0_i32_0 : i32, i32
  }
  func.func @transform_2(%arg0: i32) -> (i32, i32) {
    %c0_i32 = arith.constant 0 : i32
    %c0_i32_0 = arith.constant 0 : i32
    %c0_i32_1 = arith.constant 0 : i32
    return %c0_i32, %c0_i32_0 : i32, i32
  }
  func.func @transform_3(%arg0: i32) -> (i32, i32) {
    %c0_i32 = arith.constant 0 : i32
    %c0_i32_0 = arith.constant 0 : i32
    return %arg0, %c0_i32 : i32, i32
  }
}

</mosaic_0001>

<bundles_post_ra>
// kernel: tpu_custom_call.1
= control target key start
LH: loop header
LB: loop body
LE: loop exit
PB: predicated region body
PF: predicated region fallthrough
CT: control target
= control target key end

     0   :  { %8 = vsyncpa [#allocation3], 0  ;;  %s979_s0 = inlined_call_operand.hbm [shape: bf16[64,192], index: 0, kind: input, shape index: {}]   ;;  %s980_s1 = inlined_call_operand.hbm [shape: bf16[192,128], index: 1, kind: input, shape index: {}]   ;;  %s981_s2 = inlined_call_operand.vmem [shape: f32[1,128], index: 2, kind: input, shape index: {}]   ;;  %s982_s3 = inlined_call_operand.hbm [shape: f32[64,128], index: 3, kind: output, shape index: {}]  }
   0x1   :  { %10 = vsyncpa [#allocation3 + $0x1], 0 }
   0x2   :  { %11 = vsyncpa [#allocation6], 0 }
   0x3   :  { %12 = vsyncpa [#allocation4], 0 }
   0x4   :  { %14 = vsyncpa [#allocation4 + $0x1], 0  ;;  %s789_s12 = smov 0   ;;  %s791_s13 = smov 0  }
   0x5   :  { %s793_s14 = smov 0   ;;  %s795_s15 = smov 0  }
   0x6 LB: > { %s810_s16 = sadd.s32 4294967295, %s757_s15   ;;  %s490_s17 = sadd.s32 4294967294, %s757_s15   ;;  %s757_s15 = sphi %s795_s15, %s1004_s15   ;;  %s753_s14 = sphi %s793_s14, %s1003_s14   ;;  %s749_s13 = sphi %s791_s13, %s1002_s13   ;;  %s745_s12 = sphi %s789_s12, %s1001_s12  }
   0x7   : > { %p40_p0 = scmp.ne.s32.totalorder %s749_s13, %s745_s12  ;;  %p983_p1 = scmp.eq.s32.totalorder %s810_s16, 0 }
   0x8   : > { %p112_p3 = scmp.eq.s32.totalorder %s490_s17, 1  ;;  %p491_p5 = scmp.ge.s32.totalorder %s757_s15, 1 }
   0x9   : > { %p819_p4 = por %p983_p1, %p40_p0  ;;  %p119_p7 = scmp.lt.s32.totalorder %s757_s15, 3 }
   0xa   : > { %p824_p6 = por %p112_p3, %p40_p0  ;;  %s759_s21 = smov [#allocation5]  }
   0xb   : > { %s987_s18 = scalar_select %p819_p4, 1, 0 }
   0xc   : > { %s988_s19 = scalar_select %p824_p6, 1, 0 }
   0xd   : > { %p829_p8 = pnand %p491_p5, %p119_p7  ;;  %s131_s22 = sshll.u32 %s759_s21, 4  ;;  %s132_s22 = int_to_ptr.vmem [resolvable:$true] %s131_s22 }
   0xe   : > { %s843_s24 = sadd.s32 1, %s757_s15   ;;  %s27_s25 = sadd.s32 1, %s753_s14 }
   0xf   : > { %s989_s20 = scalar_select %p829_p8, 1, 0 }
  0x10   : > { %p561_p9 = pneg %p829_p8  ;;  %s24_s26 = ssub.s32 %s757_s15, %s843_s24 }
  0x11   : > { %s646_s27 = scalar_lea.vmem %s132_s22, 1536  ;;  %p654_p5 = scmp.lt.s32.totalorder %s132_s22, %s132_s22 }
  0x12   : > { %p838_p11 = pnand %p561_p9, %p983_p1  ;;  %p647_p13 = scmp.ne.s32.totalorder %s132_s22, %s646_s27 }
  0x13   : > { %p655_p7 = scmp.lt.s32.totalorder %s646_s27, %s646_s27 }
  0x14   : > { %p637_p12 = pneg %p838_p11 }
  0x15   : > { %p656_p10 = por %p655_p7, %p654_p5 }
  0x16   : > { %p649_p0 = pnand %p647_p13, %p637_p12 }
  0x18   : > { %p650_p3 = pneg %p649_p0 }
  0x1a   : > { %p657_p2 = pnand %p656_p10, %p650_p3 }
  0x1c   : > { %660 = shalt.err (!%p657_p2)
}
  0x1d   : > { %s760_s28 = smov 64   ;;  %s761_s29 = smov 4  }
  0x1e   : > { %564 = dma.hbm_to_vmem [thread:$0]  (!%p838_p11), %s980_s1, 1536, %s132_s22, [#allocation6], %s760_s28, %s760_s28, %s761_s29  }
  0x1f   : > { %p25_p9 = scmp.eq.s32.totalorder %s24_s26, 0  ;;  %p34_p12 = scmp.ne.s32.totalorder %s753_s14, %s749_s13 }
  0x20   : > { %p35_p10 = scmp.eq.s32.totalorder %s757_s15, 0  ;;  %p574_p2 = scmp.lt.s32.totalorder %s757_s15, 2 }
  0x21   : > { %s860_s5 = scalar_select %p25_p9, %s753_s14, %s27_s25  }
  0x22   : > { %p36_p13 = por %p35_p10, %p34_p12  ;;  %p991_p0 = scmp.eq.s32.totalorder %s810_s16, 1 }
  0x23   : > { %s148_s7 = sand.u32 1, %s753_s14   ;;  %s527_s8 = sshll.u32 %s757_s15, 9 }
  0x24   : > { %p864_p3 = por %p991_p0, %p34_p12  ;;  %s494_s9 = sshll.u32 %s148_s7, 5 }
  0x25   : > { %s873_s17 = scalar_lea.hbm %s979_s0, %s527_s8  ;;  %s152_s21 = scalar_lea.vmem [#allocation2], %s494_s9 }
  0x26   : > { %s992_s6 = scalar_select %p864_p3, 1, 0 }
  0x27   : > { %s160_s22 = sshll.u32 %s152_s21, 4  ;;  %p875_p11 = pnand %p574_p2, %p36_p13  ;;  %s879_s22 = int_to_ptr.vmem [resolvable:$true] %s160_s22 }
  0x28   : > { %s881_s25 = scalar_lea.sflag [#allocation3], %s148_s7  ;;  %s661_s26 = scalar_lea.hbm %s873_s17, 512 }
  0x29   : > { %p662_p5 = scmp.ne.s32.totalorder %s873_s17, %s661_s26  ;;  %p663_p7 = pneg %p875_p11 }
  0x2a   : > { %s666_s29 = scalar_lea.hbm %s979_s0, 1024  ;;  %p667_p10 = scmp.lt.s32.totalorder %s873_s17, %s979_s0 }
  0x2b   : > { %p664_p9 = pnand %p663_p7, %p662_p5  ;;  %p668_p2 = scmp.lt.s32.totalorder %s666_s29, %s661_s26 }
  0x2d   : > { %p665_p12 = pneg %p664_p9  ;;  %p669_p13 = por %p668_p2, %p667_p10 }
  0x2f   : > { %p670_p0 = pnand %p669_p13, %p665_p12 }
  0x31   : > { %673 = shalt.err (!%p670_p0)
}
  0x32   : > { %s674_s7 = scalar_lea.vmem %s879_s22, 512  ;;  %s762_s8 = smov [#allocation2]  }
  0x33   : > { %p675_p1 = scmp.ne.s32.totalorder %s879_s22, %s674_s7  ;;  %s679_s9 = sshll.u32 %s762_s8, 4  ;;  %s680_s9 = int_to_ptr.vmem [resolvable:$false] %s679_s9 }
  0x34   : > { %s681_s10 = scalar_lea.vmem %s680_s9, 1024  ;;  %p682_p9 = scmp.lt.s32.totalorder %s879_s22, %s680_s9 }
  0x35   : > { %p677_p6 = pnand %p675_p1, %p663_p7  ;;  %p683_p3 = scmp.lt.s32.totalorder %s681_s10, %s674_s7 }
  0x37   : > { %p678_p5 = pneg %p677_p6  ;;  %p684_p4 = por %p683_p3, %p682_p9 }
  0x39   : > { %p685_p8 = pnand %p684_p4, %p678_p5 }
  0x3b   : > { %688 = shalt.err (!%p685_p8)
}
  0x3c   : > { %s763_s11 = smov 128   ;;  %s764_s21 = smov 8  }
  0x3d   : > { %568 = dma.hbm_to_vmem [thread:$0]  (!%p875_p11), %s873_s17, 512, %s879_s22, %s881_s25, %s763_s11, %s763_s11, %s764_s21  }
  0x3e   : > { %p994_p1 = scmp.ne.s32.totalorder %s989_s20, 0 }
  0x3f   : > { %s905_s26 = sand.u32 (!%p994_p1), 1, %s749_s13   ;;  %p995_p4 = scmp.ne.s32.totalorder (!%p994_p1), %s987_s18, 0 }
  0x40   : > { %172 = sbr.rel (%p994_p1) target bundleno = 335 (0x14f), region = 32  ;;  %s499_s27 = sshll.u32 (!%p994_p1), %s905_s26, 5 }
  0x41   : > { %s175_s28 = scalar_lea.sflag (!%p994_p1), [#allocation3], %s905_s26  ;;  %s911_s29 = scalar_lea.vmem (!%p994_p1), [#allocation2], %s499_s27 }
  0x45   : > { %732 = dma.done.wait (%p995_p4), %s175_s28, 512  }
  0x46   : > { %734 = vsyncadd (%p995_p4), %s175_s28, 4294966784  ;;  %p996_p6 = scmp.eq.s32.totalorder %s810_s16, 0 }
  0x48   : > { %736 = dma.done.wait (%p996_p6), [#allocation6], 1536   ;;  %p997_p8 = pmov %p996_p6 }
  0x49   : > { %v765_v0 = vmov 0   ;;  %v617_v1 = vld [vmem:[#allocation5 + $0x38] sm:$0xff]   ;;  %v618_v2 = vld [vmem:[#allocation5 + $0x30] sm:$0xff]   ;;  %v619_v3 = vld [vmem:[#allocation5 + $0x28] sm:$0xff]   ;;  %vm333_vm0 = vcmask 523264   ;;  %s204_s17 = scalar_lea.vmem [#allocation7], %s499_s27 }
  0x4a   : > { %738 = vsyncadd (%p997_p8), [#allocation6], 4294965760  ;;  %340 = vmatprep.subr.bf16.mxu0 %v765_v0  ;;  %529 = vmatprep.subr.bf16.mxu1 %v765_v0  ;;  %v620_v4 = vld [vmem:[#allocation5 + $0x20] sm:$0xff]   ;;  %v621_v6 = vld [vmem:[#allocation5 + $0x18] sm:$0xff]   ;;  %s407_s22 = sshll.u32 %s204_s17, 4  ;;  %s528_s23 = sshll.u32 %s810_s16, 9  ;;  %s931_s22 = int_to_ptr.vmem [resolvable:$true] %s407_s22 }
  0x4b   : > { %341 = vmatpush1.bf16.msra.mxu0 %v617_v1  ;;  %541 = vmatpush1.bf16.msra.mxu1 %v617_v1  ;;  %v631_v5 = vld [vmem:[%s911_s29 + $0x4] ss:$8 sps:$4 sm:$0xff]   ;;  %v634_v7 = vld [vmem:[%s911_s29 + $0x14] ss:$8 sps:$4 sm:$0xff]   ;;  %v629_v15 = vld [vmem:[%s911_s29] ss:$8 sps:$4 sm:$0xff]   ;;  %s936_s4 = scalar_lea.hbm %s982_s3, %s528_s23 }
  0x4c   : > { %342 = vmatprep.subr.bf16.mxu0 %v765_v0  ;;  %530 = vmatprep.subr.bf16.mxu1 %v765_v0  ;;  %v622_v8 = vld [vmem:[#allocation5 + $0x10] sm:$0xff]   ;;  %v623_v9 = vld [vmem:[#allocation5 + $0x8] sm:$0xff]   ;;  %v624_v10 = vld [vmem:[#allocation5] sm:$0xff]   ;;  %s394_s16 = scalar_lea.sflag [#allocation4], %s905_s26  ;;  %s689_s7 = scalar_lea.vmem %s931_s22, 512 }
  0x4d   : > { %519 = vmatprep.mubr.msk.bf16.mxu0 %vm333_vm0, %v631_v5  ;;  %520 = vmatprep.mubr.msk.bf16.mxu1 %vm333_vm0, %v634_v7  ;;  %v625_v11 = vld [vmem:[#allocation5 + $0x58] sm:$0xff]   ;;  %v626_v12 = vld [vmem:[#allocation5 + $0x50] sm:$0xff]   ;;  %v627_v13 = vld [vmem:[#allocation5 + $0x48] sm:$0xff]   ;;  %p690_p3 = scmp.ne.s32.totalorder %s931_s22, %s689_s7  ;;  %p998_p11 = scmp.ne.s32.totalorder %s992_s6, 0 }
  0x4e   : > { %v628_v14 = vld [vmem:[#allocation5 + $0x40] sm:$0xff]   ;;  %v632_v16 = vld [vmem:[%s911_s29 + $0x10] ss:$8 sps:$4 sm:$0xff]   ;;  %s766_s8 = smov [#allocation7]  }
  0x4f   : > { %343 = vmatpush1.bf16.msra.mxu0 %v618_v2  ;;  %542 = vmatpush1.bf16.msra.mxu1 %v618_v2  ;;  %v502_v17 = vld [vmem:[%s981_s2] ss:$0 sm:$0xff]  ;;  %p691_p7 = pnand %p690_p3, %p998_p11  ;;  %s693_s9 = sshll.u32 %s766_s8, 4  ;;  %s694_s9 = int_to_ptr.vmem [resolvable:$false] %s693_s9 }
  0x50   : > { %344 = vmatprep.subr.bf16.mxu0 %v765_v0  ;;  %531 = vmatprep.subr.bf16.mxu1 %v765_v0  ;;  %s695_s10 = scalar_lea.vmem %s694_s9, 1024  ;;  %p696_p10 = scmp.lt.s32.totalorder %s931_s22, %s694_s9 }
  0x51   : > { %p692_p12 = pneg %p691_p7  ;;  %p697_p2 = scmp.lt.s32.totalorder %s695_s10, %s689_s7 }
  0x53   : > { %345 = vmatpush1.bf16.msra.mxu0 %v619_v3  ;;  %543 = vmatpush1.bf16.msra.mxu1 %v619_v3  ;;  %p698_p13 = por %p697_p2, %p696_p10 }
  0x54   : > { %346 = vmatprep.subr.bf16.mxu0 %v765_v0  ;;  %532 = vmatprep.subr.bf16.mxu1 %v765_v0 }
  0x55   : > { %p699_p0 = pnand %p698_p13, %p692_p12 }
  0x57   : > { %347 = vmatpush1.bf16.msra.mxu0 %v620_v4  ;;  %544 = vmatpush1.bf16.msra.mxu1 %v620_v4 }
  0x58   : > { %348 = vmatprep.subr.bf16.mxu0 %v765_v0  ;;  %533 = vmatprep.subr.bf16.mxu1 %v765_v0 }
  0x5b   : > { %349 = vmatpush1.bf16.msra.mxu0 %v621_v6  ;;  %545 = vmatpush1.bf16.msra.mxu1 %v621_v6 }
  0x5c   : > { %350 = vmatprep.subr.bf16.mxu0 %v765_v0  ;;  %534 = vmatprep.subr.bf16.mxu1 %v765_v0 }
  0x5f   : > { %351 = vmatpush1.bf16.msra.mxu0 %v622_v8  ;;  %546 = vmatpush1.bf16.msra.mxu1 %v622_v8 }
  0x60   : > { %352 = vmatprep.subr.bf16.mxu0 %v765_v0  ;;  %535 = vmatprep.subr.bf16.mxu1 %v765_v0 }
  0x63   : > { %353 = vmatpush1.bf16.msra.mxu0 %v623_v9  ;;  %547 = vmatpush1.bf16.msra.mxu1 %v623_v9 }
  0x64   : > { %354 = vmatprep.subr.bf16.mxu0 %v765_v0  ;;  %536 = vmatprep.subr.bf16.mxu1 %v765_v0 }
  0x67   : > { %355 = vmatpush1.bf16.msra.mxu0 %v624_v10  ;;  %548 = vmatpush1.bf16.msra.mxu1 %v624_v10 }
  0x68   : > { %364 = vmatprep.subr.bf16.mxu0 %v765_v0  ;;  %537 = vmatprep.subr.bf16.mxu1 %v765_v0 }
  0x6b   : > { %365 = vmatpush2.bf16.msra.mxu0 %v625_v11  ;;  %549 = vmatpush2.bf16.msra.mxu1 %v625_v11 }
  0x6c   : > { %366 = vmatprep.subr.bf16.mxu0 %v765_v0  ;;  %538 = vmatprep.subr.bf16.mxu1 %v765_v0 }
  0x6f   : > { %367 = vmatpush2.bf16.msra.mxu0 %v626_v12  ;;  %550 = vmatpush2.bf16.msra.mxu1 %v626_v12 }
  0x70   : > { %368 = vmatprep.subr.bf16.mxu0 %v765_v0  ;;  %539 = vmatprep.subr.bf16.mxu1 %v765_v0 }
  0x73   : > { %369 = vmatpush2.bf16.msra.mxu0 %v627_v13  ;;  %551 = vmatpush2.bf16.msra.mxu1 %v627_v13 }
  0x74   : > { %370 = vmatprep.subr.bf16.mxu0 %v765_v0  ;;  %540 = vmatprep.subr.bf16.mxu1 %v765_v0 }
  0x77   : > { %371 = vmatpush2.bf16.msra.mxu0 %v628_v14  ;;  %552 = vmatpush2.bf16.msra.mxu1 %v628_v14 }
  0x7a   : > { %373 = vmatmul.mubr.bf16.vlgmr.msra.gmra.mxu0 %v629_v15  ;;  %381 = vmatmul.mubr.bf16.vlgmr.msra.gmra.mxu1 %v632_v16 }
 0x13a   : > { %v374_v18 = vpop.f32.mrf.mxu0  ;;  %v382_v19 = vpop.f32.mrf.mxu1 }
 0x13b   : > { %v375_v20 = vadd.f32 %v502_v17, %v374_v18  ;;  %v383_v21 = vadd.f32 %v502_v17, %v382_v19 }
 0x13c   : > { %v376_v22 = vpop.f32.mrf.mxu0  ;;  %v384_v23 = vpop.f32.mrf.mxu1 }
 0x13d   : > { %389 = vst [vmem:[%s204_s17] sm:$0xff] %v375_v20  ;;  %391 = vst [vmem:[%s204_s17 + $0x10] sm:$0xff] %v383_v21 }
 0x13e   : > { %v377_v24 = vpop.f32.mrf.mxu0  ;;  %v385_v25 = vpop.f32.mrf.mxu1 }
 0x13f   : > { %v378_v26 = vadd.f32 %v502_v17, %v377_v24  ;;  %v386_v27 = vadd.f32 %v502_v17, %v385_v25 }
 0x140   : > { %v379_v28 = vpop.f32.mrf.mxu0  ;;  %v387_v29 = vpop.f32.mrf.mxu1 }
 0x141   : > { %390 = vst [vmem:[%s204_s17 + $0x8] sm:$0xff] %v378_v26  ;;  %392 = vst [vmem:[%s204_s17 + $0x18] sm:$0xff] %v386_v27 }
 0x142   : > { %702 = shalt.err (!%p699_p0)
}
 0x143   : > { %s703_s11 = scalar_lea.hbm %s936_s4, 512  ;;  %s707_s28 = scalar_lea.hbm %s982_s3, 1024 }
 0x144   : > { %p704_p5 = scmp.ne.s32.totalorder %s936_s4, %s703_s11  ;;  %p708_p4 = scmp.lt.s32.totalorder %s936_s4, %s982_s3 }
 0x145   : > { %p709_p6 = scmp.lt.s32.totalorder %s707_s28, %s703_s11 }
 0x146   : > { %p705_p9 = pnand %p704_p5, %p998_p11 }
 0x147   : > { %p710_p8 = por %p709_p6, %p708_p4 }
 0x148   : > { %p706_p1 = pneg %p705_p9 }
 0x14a   : > { %p711_p3 = pnand %p710_p8, %p706_p1 }
 0x14c   : > { %714 = shalt.err (!%p711_p3)
}
 0x14d   : > { %s767_s20 = smov 128   ;;  %s768_s17 = smov 8  }
 0x14e   : > { %559 = dma.vmem_to_hbm [thread:$0]  (%p998_p11), %s931_s22, 512, %s936_s4, %s394_s16, %s767_s20, %s767_s20, %s768_s17  }
 0x14f PF: > { %s422_s23 = sand.u32 1, %s745_s12   ;;  %p999_p7 = scmp.ne.s32.totalorder %s988_s19, 0 }
 0x150   : > { %p1000_p12 = scmp.ge.s32.totalorder %s757_s15, 2  ;;  %s423_s25 = scalar_lea.sflag [#allocation4], %s422_s23 }
 0x152   : > { %p570_p10 = pnand %p1000_p12, %p999_p7 }
 0x154   : > { %p571_p2 = pneg %p570_p10 }
 0x156   : > { %740 = dma.done.wait (%p571_p2), %s423_s25, 512  }
 0x157   : > { %742 = vsyncadd (%p571_p2), %s423_s25, 4294966784  ;;  %p17_p13 = scmp.ge.s32.totalorder %s843_s24, 4   ;;  %s1001_s12 = smov %s749_s13 }
 0x158   : > { %s1002_s13 = smov %s753_s14  ;;  %s1003_s14 = smov %s860_s5 }
 0x159   : > { %s1004_s15 = smov %s843_s24  ;;  %19 = sbr.rel (!%p17_p13) target bundleno = 6 (0x6), region = 81 }
 0x15e   :  { %428 = vsyncpa [#allocation3], 1 }
 0x15f   :  { %430 = vsyncpa [#allocation3 + $0x1], 1 }
 0x160   :  { %431 = vsyncpa [#allocation6], 1 }
 0x161   :  { %432 = vsyncpa [#allocation4], 1 }
 0x162   :  { %434 = vsyncpa [#allocation4 + $0x1], 1 }

</bundles_post_ra>
